<compile_context>
chip_gen: v7x
topology: tpu7x:2x2x1
jax: 0.10.0
libtpu: 0.0.40
codegen_flags: <defaults>
</compile_context>

<pallas_src>
import jax
import jax.numpy as jnp
from jax.experimental import pallas as pl
from jax.experimental.pallas import tpu as pltpu


# ---------------------------------------------------------------------------
# Phase A: pool-sum + 1x1 conv + BN bias + ReLU  ->  y of shape (N, C_out, 1)
# ---------------------------------------------------------------------------
def _pool_matmul_kernel(x_ref, w_ref, bias_ref, y_ref, acc_ref):
    # x_ref:    (NB, CK, HW)   batch block x C_in chunk, spatial on lanes
    # w_ref:    (CK, C_out)    folded conv weight chunk: (scale * w / HW).T
    # bias_ref: (1, C_out)     folded BN bias = beta - running_mean * scale
    # y_ref:    (NB, C_out, 1) f32 pooled + conv + BN + ReLU result
    # acc_ref:  (NB, C_out)    f32 accumulator across C_in chunks
    k = pl.program_id(1)

    @pl.when(k == 0)
    def _init():
        acc_ref[...] = jnp.zeros_like(acc_ref)

    hw = x_ref.shape[-1]
    lanes = 128
    if hw % lanes == 0 and hw > lanes:
        # Stage the HW reduction: VPU elementwise adds over 128-lane chunks,
        # then a single cross-lane (XLU) reduce of the 128-wide partial.
        partial = x_ref[:, :, 0:lanes].astype(jnp.float32)
        for j in range(1, hw // lanes):
            partial = partial + x_ref[:, :, j * lanes:(j + 1) * lanes].astype(jnp.float32)
        pooled = jnp.sum(partial, axis=-1)                            # (NB, CK)
    else:
        pooled = jnp.sum(x_ref[...].astype(jnp.float32), axis=-1)     # (NB, CK)

    # 1x1 conv; BN scale and the 1/HW mean factor are folded into w_ref.
    acc_ref[...] += jnp.dot(pooled, w_ref[...],
                            preferred_element_type=jnp.float32)       # (NB, C_out)

    @pl.when(k == pl.num_programs(1) - 1)
    def _finalize():
        y = jnp.maximum(acc_ref[...] + bias_ref[...], 0.0)            # BN bias + ReLU
        y_ref[...] = y[:, :, None].astype(y_ref.dtype)


# ---------------------------------------------------------------------------
# Phase B: broadcast (== bilinear upsample of a 1x1 map), lane-dense writes.
# ---------------------------------------------------------------------------
def _broadcast_kernel(y_ref, o_ref):
    # y_ref: (NB, CB, 1) f32;   o_ref: (NB, CB, HWT)
    o_ref[...] = jnp.broadcast_to(y_ref[...], o_ref.shape).astype(o_ref.dtype)


# ---------------------------------------------------------------------------
# Tiling helpers (generation-aware VMEM budget)
# ---------------------------------------------------------------------------
def _divisors_desc(n):
    return [d for d in range(n, 0, -1) if n % d == 0]


def _vmem_capacity_bytes():
    try:
        cap = getattr(pltpu.get_tpu_info(), "vmem_capacity_bytes", None)
        if cap:
            return int(cap)
    except Exception:
        pass
    return 64 * 2 ** 20  # conservative default (v7x physical VMEM)


def _choose_pool_tiles(N, C_in, C_out, HW, itemsize, budget_bytes):
    """Largest (batch block NB, C_in chunk CK) whose pipelined blocks fit."""
    def need(nb, ck):
        x_b = 2 * nb * ck * HW * itemsize       # double-buffered input block
        w_b = 2 * ck * C_out * 4
        y_b = 2 * nb * C_out * 4
        misc = nb * C_out * 4 + C_out * 4       # f32 accumulator + bias block
        return x_b + w_b + y_b + misc

    sublane = {1: 32, 2: 16}.get(itemsize, 8)

    nb_cands = _divisors_desc(N)
    if N > 1:
        # keep >= 2 batch blocks so the leading "parallel" axis can use both
        # v7x TensorCores; near-zero cost on single-core chips.
        nb_cands = [d for d in nb_cands if d <= N // 2] or [1]

    # CK = C_in preferred (single reduction step); otherwise sublane/8-aligned.
    ck_cands = [d for d in _divisors_desc(C_in)
                if d == C_in or (d % 8 == 0 and d >= sublane)] or [C_in]

    for ck in ck_cands:          # prefer the full reduction first
        for nb in nb_cands:      # then the largest batch block that fits
            if need(nb, ck) <= budget_bytes:
                return nb, ck, need(nb, ck)
    nb, ck = nb_cands[-1], ck_cands[-1]
    return nb, ck, need(nb, ck)  # over budget: vmem_limit is raised (clamped)


def _choose_bcast_tiles(N, C_out, HW, itemsize, budget_bytes):
    def need(nb, cb, hwt):
        return 2 * nb * cb * hwt * itemsize + 2 * nb * cb * 4

    nb_cands = _divisors_desc(N)
    if N > 1:
        nb_cands = [d for d in nb_cands if d <= N // 2] or [1]
    cb_cands = [d for d in _divisors_desc(C_out)
                if d == C_out or d % 8 == 0] or [C_out]
    # lane-dense HW tiles (multiples of 128); full-extent block if HW is ragged
    hwt_cands = [d for d in _divisors_desc(HW) if d % 128 == 0] or [HW]

    for cb in cb_cands:
        for hwt in hwt_cands:
            for nb in nb_cands:
                if need(nb, cb, hwt) <= budget_bytes:
                    return nb, cb, hwt, need(nb, cb, hwt)
    nb, cb, hwt = nb_cands[-1], cb_cands[-1], hwt_cands[-1]
    return nb, cb, hwt, need(nb, cb, hwt)


# ---------------------------------------------------------------------------
# Wrapper
# ---------------------------------------------------------------------------
def aspp_pooling(x, w, gamma, beta, running_mean, running_var, eps=1e-5):
    """x: (N, C_in, H, W)  ->  (N, C_out, H, W).  BatchNorm in eval mode."""
    N, C_in, H, W = x.shape
    C_out = w.shape[0]
    HW = H * W
    itemsize = jnp.dtype(x.dtype).itemsize

    # Fold BatchNorm (eval) and the 1/HW mean factor into the conv weight.
    scale = gamma.astype(jnp.float32) / jnp.sqrt(running_var.astype(jnp.float32) + eps)
    w_folded = (w.astype(jnp.float32).reshape(C_out, C_in)
                * scale[:, None] / HW).T                               # (C_in, C_out)
    bias = (beta.astype(jnp.float32)
            - running_mean.astype(jnp.float32) * scale).reshape(1, C_out)

    x2 = x.reshape(N, C_in, HW)

    capacity = _vmem_capacity_bytes()
    budget = int(capacity * 0.80)          # ~51 MiB on v7x, ~102 MiB on v5e/v6e
    limit_cap = capacity - (4 << 20)       # never request more than physical - 4 MiB

    # ---------------- Phase A: pooled sum + matmul + bias + ReLU ------------
    NB, CK, need_a = _choose_pool_tiles(N, C_in, C_out, HW, itemsize, budget)
    vmem_a = int(min(limit_cap, max(need_a + (4 << 20), 32 << 20)))
    # TODO(synk): sweep pipeline_mode=pl.Buffered(3) on the x spec where VMEM
    # headroom allows; left at default double-buffering for portability.

    cost_a = pl.CostEstimate(
        flops=int(N * C_in * HW + 2 * N * C_in * C_out + 2 * N * C_out),
        transcendentals=0,
        bytes_accessed=int(N * C_in * HW * itemsize + C_in * C_out * 4
                           + C_out * 4 + N * C_out * 4),
    )

    y = pl.pallas_call(
        _pool_matmul_kernel,
        out_shape=jax.ShapeDtypeStruct((N, C_out, 1), jnp.float32),
        grid=(N // NB, C_in // CK),
        in_specs=[
            pl.BlockSpec((NB, CK, HW), lambda b, k: (b, k, 0)),
            pl.BlockSpec((CK, C_out), lambda b, k: (k, 0)),
            pl.BlockSpec((1, C_out), lambda b, k: (0, 0)),
        ],
        out_specs=pl.BlockSpec((NB, C_out, 1), lambda b, k: (b, 0, 0)),
        scratch_shapes=[pltpu.VMEM((NB, C_out), jnp.float32)],
        compiler_params=pltpu.CompilerParams(
            dimension_semantics=("parallel", "arbitrary"),
            vmem_limit_bytes=vmem_a,
        ),
        cost_estimate=cost_a,
    )(x2, w_folded, bias)

    # ---------------- Phase B: broadcast back to (H, W) ---------------------
    NB2, CB, HWT, need_b = _choose_bcast_tiles(N, C_out, HW, itemsize, budget)
    vmem_b = int(min(limit_cap, max(need_b + (4 << 20), 32 << 20)))

    cost_b = pl.CostEstimate(
        flops=0,
        transcendentals=0,
        bytes_accessed=int(N * C_out * 4 + N * C_out * HW * itemsize),
    )

    out = pl.pallas_call(
        _broadcast_kernel,
        out_shape=jax.ShapeDtypeStruct((N, C_out, HW), x.dtype),
        grid=(N // NB2, C_out // CB, HW // HWT),
        in_specs=[pl.BlockSpec((NB2, CB, 1), lambda b, c, t: (b, c, 0))],
        out_specs=pl.BlockSpec((NB2, CB, HWT), lambda b, c, t: (b, c, t)),
        compiler_params=pltpu.CompilerParams(
            dimension_semantics=("parallel", "parallel", "parallel"),
            vmem_limit_bytes=vmem_b,
        ),
        cost_estimate=cost_b,
    )(y)

    return out.reshape(N, C_out, H, W)


# ---------------------------------------------------------------------------
# Pure-JAX reference of the PyTorch forward (BN in eval mode)
# ---------------------------------------------------------------------------
def _reference(x, w, gamma, beta, running_mean, running_var, eps=1e-5):
    pooled = jnp.mean(x, axis=(2, 3))                     # (N, C_in)
    y = pooled @ w.T                                      # (N, C_out)
    y = (y - running_mean) / jnp.sqrt(running_var + eps) * gamma + beta
    y = jnp.maximum(y, 0.0)
    H, W = x.shape[2], x.shape[3]
    return jnp.broadcast_to(y[:, :, None, None], (x.shape[0], w.shape[0], H, W))


if __name__ == "__main__":
    key = jax.random.PRNGKey(0)
    k_x, k_w, k_g, k_b, k_m, k_v = jax.random.split(key, 6)

    N, C_in, C_out, H, W = 2, 4, 8, 16, 16

    x = jax.random.normal(k_x, (N, C_in, H, W), dtype=jnp.float32)
    # Deterministic synthetic parameters (shapes from the module __init__).
    w = jax.random.normal(k_w, (C_out, C_in), dtype=jnp.float32) * 0.1   # Conv2d 1x1, no bias
    gamma = 1.0 + 0.1 * jax.random.normal(k_g, (C_out,), dtype=jnp.float32)
    beta = 0.1 * jax.random.normal(k_b, (C_out,), dtype=jnp.float32)
    running_mean = 0.05 * jax.random.normal(k_m, (C_out,), dtype=jnp.float32)
    running_var = 1.0 + 0.1 * jnp.abs(jax.random.normal(k_v, (C_out,), dtype=jnp.float32))

    out = aspp_pooling(x, w, gamma, beta, running_mean, running_var)
    out = jax.block_until_ready(out)

    ref = _reference(x, w, gamma, beta, running_mean, running_var)
    assert out.shape == (N, C_out, H, W)
    assert jnp.allclose(out, ref, atol=1e-5, rtol=1e-5)

    print("KERNEL_OK")
</pallas_src>

<mosaic_0001>
module attributes {stable_mosaic.version = 11 : i64} {
  func.func @_pool_matmul_kernel(%arg0: i32, %arg1: i32, %arg2: memref<1x4x256xf32, #tpu.memory_space<vmem>>, %arg3: memref<4x8xf32, #tpu.memory_space<vmem>>, %arg4: memref<1x8xf32, #tpu.memory_space<vmem>>, %arg5: memref<1x8x1xf32, #tpu.memory_space<vmem>>, %arg6: memref<1x8xf32, #tpu.memory_space<vmem>>) attributes {dimension_semantics = [#tpu.dimension_semantics<parallel>, #tpu.dimension_semantics<arbitrary>], iteration_bounds = array<i64: 2, 1>, scalar_prefetch = 0 : i64, scratch_operands = 1 : i64, tpu.core_type = #tpu.core_type<tc>, window_params = [{transform_indices = @transform_0, window_bounds = array<i64: 1, 4, 256>}, {transform_indices = @transform_1, window_bounds = array<i64: 4, 8>}, {pipeline_mode = #tpu.pipeline_mode<synchronous>, transform_indices = @transform_2, window_bounds = array<i64: 1, 8>}, {transform_indices = @transform_3, window_bounds = array<i64: 1, 8, 1>}]} {
    %c0_i32 = arith.constant 0 : i32
    %0 = arith.cmpi eq, %arg1, %c0_i32 : i32
    %1 = arith.extui %0 : i1 to i32
    %c0_i32_0 = arith.constant 0 : i32
    %2 = arith.cmpi ne, %1, %c0_i32_0 : i32
    scf.if %2 {
      %cst_14 = arith.constant 0.000000e+00 : f32
      %15 = vector.broadcast %cst_14 : f32 to vector<1x8xf32>
      %c0_15 = arith.constant 0 : index
      %c0_16 = arith.constant 0 : index
      %16 = vector.load %arg6[%c0_15, %c0_16] : memref<1x8xf32, #tpu.memory_space<vmem>>, vector<1x8xf32>
      tpu.vector_store %arg6[%c0_15, %c0_16], %15 {strides = array<i32>} : memref<1x8xf32, #tpu.memory_space<vmem>>, vector<1x8xf32>,
    } else {
    }
    %c0 = arith.constant 0 : index
    %c0_1 = arith.constant 0 : index
    %c0_2 = arith.constant 0 : index
    %3 = vector.load %arg2[%c0, %c0_1, %c0_2] : memref<1x4x256xf32, #tpu.memory_space<vmem>>, vector<1x4x128xf32>
    %c0_3 = arith.constant 0 : index
    %c0_4 = arith.constant 0 : index
    %c128 = arith.constant 128 : index
    %4 = vector.load %arg2[%c0_3, %c0_4, %c128] : memref<1x4x256xf32, #tpu.memory_space<vmem>>, vector<1x4x128xf32>
    %5 = arith.addf %3, %4 : vector<1x4x128xf32>
    %cst = arith.constant dense<0.000000e+00> : vector<1x4xf32>
    %6 = vector.multi_reduction <add>, %5, %cst [2] : vector<1x4x128xf32> to vector<1x4xf32>
    %c0_5 = arith.constant 0 : index
    %c0_6 = arith.constant 0 : index
    %7 = vector.load %arg6[%c0_5, %c0_6] : memref<1x8xf32, #tpu.memory_space<vmem>>, vector<1x8xf32>
    %c0_7 = arith.constant 0 : index
    %c0_8 = arith.constant 0 : index
    %8 = vector.load %arg3[%c0_7, %c0_8] : memref<4x8xf32, #tpu.memory_space<vmem>>, vector<4x8xf32>
    %cst_9 = arith.constant dense<0.000000e+00> : vector<1x8xf32>
    %9 = tpu.matmul %6, %8, %cst_9 {dimension_numbers = #tpu.dot_dimension_numbers<[1], [0], [0], [1], [0, 0, 1, 1], [], []>} : vector<1x4xf32>, vector<4x8xf32>, vector<1x8xf32> -> vector<1x8xf32>
    %10 = arith.addf %7, %9 : vector<1x8xf32>
    %c0_10 = arith.constant 0 : index
    %c0_11 = arith.constant 0 : index
    %11 = vector.load %arg6[%c0_10, %c0_11] : memref<1x8xf32, #tpu.memory_space<vmem>>, vector<1x8xf32>
    tpu.vector_store %arg6[%c0_10, %c0_11], %10 {strides = array<i32>} : memref<1x8xf32, #tpu.memory_space<vmem>>, vector<1x8xf32>,
    %c0_i32_12 = arith.constant 0 : i32
    %12 = arith.cmpi eq, %arg1, %c0_i32_12 : i32
    %13 = arith.extui %12 : i1 to i32
    %c0_i32_13 = arith.constant 0 : i32
    %14 = arith.cmpi ne, %13, %c0_i32_13 : i32
    scf.if %14 {
      %c0_14 = arith.constant 0 : index
      %c0_15 = arith.constant 0 : index
      %15 = vector.load %arg6[%c0_14, %c0_15] : memref<1x8xf32, #tpu.memory_space<vmem>>, vector<1x8xf32>
      %c0_16 = arith.constant 0 : index
      %c0_17 = arith.constant 0 : index
      %16 = vector.load %arg4[%c0_16, %c0_17] : memref<1x8xf32, #tpu.memory_space<vmem>>, vector<1x8xf32>
      %17 = arith.addf %15, %16 : vector<1x8xf32>
      %cst_18 = arith.constant 0.000000e+00 : f32
      %18 = vector.broadcast %cst_18 : f32 to vector<1x8xf32>
      %19 = arith.maximumf %17, %18 : vector<1x8xf32>
      %20 = vector.shape_cast %19 : vector<1x8xf32> to vector<1x8x1xf32>
      %c0_19 = arith.constant 0 : index
      %c0_20 = arith.constant 0 : index
      %c0_21 = arith.constant 0 : index
      %21 = vector.load %arg5[%c0_19, %c0_20, %c0_21] : memref<1x8x1xf32, #tpu.memory_space<vmem>>, vector<1x8x1xf32>
      tpu.vector_store %arg5[%c0_19, %c0_20, %c0_21], %20 {strides = array<i32>} : memref<1x8x1xf32, #tpu.memory_space<vmem>>, vector<1x8x1xf32>,
    } else {
    }
    return
  }
  func.func @transform_0(%arg0: i32, %arg1: i32) -> (i32, i32, i32) {
    %c0_i32 = arith.constant 0 : i32
    %c0_i32_0 = arith.constant 0 : i32
    return %arg0, %arg1, %c0_i32 : i32, i32, i32
  }
  func.func @transform_1(%arg0: i32, %arg1: i32) -> (i32, i32) {
    %c0_i32 = arith.constant 0 : i32
    %c0_i32_0 = arith.constant 0 : i32
    return %arg1, %c0_i32 : i32, i32
  }
  func.func @transform_2(%arg0: i32, %arg1: i32) -> (i32, i32) {
    %c0_i32 = arith.constant 0 : i32
    %c0_i32_0 = arith.constant 0 : i32
    %c0_i32_1 = arith.constant 0 : i32
    return %c0_i32, %c0_i32_0 : i32, i32
  }
  func.func @transform_3(%arg0: i32, %arg1: i32) -> (i32, i32, i32) {
    %c0_i32 = arith.constant 0 : i32
    %c0_i32_0 = arith.constant 0 : i32
    %c0_i32_1 = arith.constant 0 : i32
    return %arg0, %c0_i32, %c0_i32_0 : i32, i32, i32
  }
}

</mosaic_0001>

<bundles_post_ra>
// kernel: tpu_custom_call.1
= control target key start
LH: loop header
LB: loop body
LE: loop exit
PB: predicated region body
PF: predicated region fallthrough
CT: control target
= control target key end

     0   :  { %8 = vsyncpa [#allocation4], 0  ;;  %s826_s0 = inlined_call_operand.hbm [shape: f32[2,4,256], index: 0, kind: input, shape index: {}]   ;;  %s827_s1 = inlined_call_operand.hbm [shape: f32[4,8], index: 1, kind: input, shape index: {}]   ;;  %s828_s2 = inlined_call_operand.vmem [shape: f32[1,8], index: 2, kind: input, shape index: {}]   ;;  %s829_s3 = inlined_call_operand.vmem [shape: f32[2,8,1], index: 3, kind: output, shape index: {}]  }
   0x1   :  { %10 = vsyncpa [#allocation4 + $0x1], 0 }
   0x2   :  { %11 = vsyncpa [#allocation6], 0  ;;  %s658_s12 = smov 0   ;;  %s660_s13 = smov 0  }
   0x3   :  { %s662_s14 = smov 0   ;;  %s664_s15 = smov 0  }
   0x4   :  { %s666_s16 = smov 0   ;;  %s668_s17 = smov 0  }
   0x5 LB: > { %s428_s18 = sadd.s32 4294967295, %s632_s17   ;;  %p51_p0 = scmp.ne.s32.totalorder %s616_s13, %s612_s12  ;;  %s632_s17 = sphi %s668_s17, %s17_s17   ;;  %s628_s16 = sphi %s666_s16, %s848_s16   ;;  %s624_s15 = sphi %s664_s15, %s847_s15   ;;  %s620_s14 = sphi %s662_s14, %s846_s14   ;;  %s616_s13 = sphi %s660_s13, %s845_s13   ;;  %s612_s12 = sphi %s658_s12, %s844_s12  }
   0x6   : > { %p688_p1 = scmp.eq.s32.totalorder %s428_s18, 0  ;;  %p430_p2 = scmp.ge.s32.totalorder %s632_s17, 1 }
   0x7   : > { %p135_p3 = scmp.lt.s32.totalorder %s632_s17, 3  ;;  %s634_s22 = smov [#allocation5]  }
   0x8   : > { %s834_s19 = scalar_select %p688_p1, 1, 0 }
   0x9   : > { %p696_p4 = por %p688_p1, %p51_p0  ;;  %p700_p5 = pnand %p430_p2, %p135_p3 }
   0xa   : > { %s150_s23 = sshll.u32 %s634_s22, 4  ;;  %s29_s25 = sadd.s32 1, %s628_s16  ;;  %s151_s23 = int_to_ptr.vmem [resolvable:$true] %s150_s23 }
   0xb   : > { %s835_s20 = scalar_select %p696_p4, 1, 0 }
   0xc   : > { %s836_s21 = scalar_select %p700_p5, 1, 0 }
   0xd   : > { %p458_p6 = pneg %p700_p5  ;;  %s38_s26 = sadd.s32 1, %s620_s14 }
   0xe   : > { %p714_p8 = scmp.ge.s32.totalorder %s29_s25, 2  ;;  %s520_s30 = scalar_lea.hbm %s827_s1, 64 }
   0xf   : > { %p708_p7 = pnand %p458_p6, %p688_p1  ;;  %p521_p9 = scmp.ne.s32.totalorder %s827_s1, %s520_s30 }
  0x10   : > { %s838_s27 = scalar_select %p714_p8, 1, 0 }
  0x11   : > { %p522_p10 = pneg %p708_p7  ;;  %p527_p13 = scmp.lt.u32.totalorder %s520_s30, %s827_s1 }
  0x13   : > { %p523_p11 = pnand %p522_p10, %p521_p9 }
  0x15   : > { %p524_p12 = pneg %p523_p11 }
  0x17   : > { %p529_p0 = pnand %p527_p13, %p524_p12 }
  0x19   : > { %532 = shalt.err (!%p529_p0)
}
  0x1a   : > { %s533_s8 = scalar_lea.vmem %s151_s23, 64  ;;  %p541_p1 = scmp.lt.s32.totalorder %s151_s23, %s151_s23 }
  0x1b   : > { %p534_p2 = scmp.ne.s32.totalorder %s151_s23, %s533_s8  ;;  %p542_p4 = scmp.lt.s32.totalorder %s533_s8, %s533_s8 }
  0x1d   : > { %p536_p3 = pnand %p534_p2, %p522_p10  ;;  %p543_p5 = por %p542_p4, %p541_p1 }
  0x1f   : > { %p537_p6 = pneg %p536_p3 }
  0x21   : > { %p544_p8 = pnand %p543_p5, %p537_p6 }
  0x23   : > { %547 = shalt.err (!%p544_p8)
}
  0x24   : > { %461 = dma.hbm_to_vmem [thread:$0]  (!%p708_p7), %s827_s1, 64, %s151_s23, [#allocation6]  }
  0x25   : > { %p839_p9 = scmp.ne.s32.totalorder %s838_s27, 0  ;;  %p45_p1 = scmp.ne.s32.totalorder %s620_s14, %s616_s13 }
  0x26   : > { %p46_p4 = scmp.eq.s32.totalorder %s632_s17, 0  ;;  %p467_p5 = scmp.lt.s32.totalorder %s632_s17, 2 }
  0x27   : > { %s850_s25 = smov (%p839_p9, %s29_s25), 0  ;;  %s164_s12 = sand.u32 1, %s620_s14  }
  0x28   : > { %s33_s11 = ssub.s32 %s628_s16, %s850_s25  ;;  %p47_p10 = por %p46_p4, %p45_p1 }
  0x29   : > { %p36_p8 = scmp.eq.s32.totalorder %s33_s11, 0  ;;  %s444_s18 = sshll.u32 %s628_s16, 7 }
  0x2a   : > { %s433_s24 = sshll.u32 %s164_s12, 3  ;;  %s754_s23 = scalar_lea.hbm %s826_s0, %s444_s18 }
  0x2b   : > { %s749_s22 = scalar_select %p36_p8, %s620_s14, %s38_s26  }
  0x2c   : > { %s168_s27 = scalar_lea.vmem [#allocation3], %s433_s24  ;;  %p756_p7 = pnand %p467_p5, %p47_p10 }
  0x2d   : > { %s178_s30 = sshll.u32 %s168_s27, 4  ;;  %s165_s26 = scalar_lea.sflag [#allocation4], %s164_s12  ;;  %s760_s30 = int_to_ptr.vmem [resolvable:$true] %s178_s30 }
  0x2e   : > { %s548_s5 = scalar_lea.hbm %s754_s23, 128  ;;  %p550_p12 = pneg %p756_p7 }
  0x2f   : > { %p549_p11 = scmp.ne.s32.totalorder %s754_s23, %s548_s5  ;;  %s553_s8 = scalar_lea.hbm %s826_s0, 256 }
  0x30   : > { %p554_p2 = scmp.lt.u32.totalorder %s754_s23, %s826_s0  ;;  %p555_p3 = scmp.lt.u32.totalorder %s553_s8, %s548_s5 }
  0x31   : > { %p551_p13 = pnand %p550_p12, %p549_p11  ;;  %p557_p9 = scmp.lt.u32.totalorder %s548_s5, %s754_s23 }
  0x32   : > { %p556_p6 = por %p555_p3, %p554_p2 }
  0x33   : > { %p552_p0 = pneg %p551_p13 }
  0x34   : > { %p558_p1 = por %p557_p9, %p556_p6 }
  0x36   : > { %p559_p4 = pnand %p558_p1, %p552_p0 }
  0x38   : > { %562 = shalt.err (!%p559_p4)
}
  0x39   : > { %s563_s11 = scalar_lea.vmem %s760_s30, 128  ;;  %s635_s12 = smov [#allocation3]  }
  0x3a   : > { %p564_p5 = scmp.ne.s32.totalorder %s760_s30, %s563_s11  ;;  %s568_s18 = sshll.u32 %s635_s12, 4  ;;  %s569_s18 = int_to_ptr.vmem [resolvable:$false] %s568_s18 }
  0x3b   : > { %s570_s24 = scalar_lea.vmem %s569_s18, 256  ;;  %p571_p11 = scmp.lt.s32.totalorder %s760_s30, %s569_s18 }
  0x3c   : > { %p566_p8 = pnand %p564_p5, %p550_p12  ;;  %p572_p13 = scmp.lt.s32.totalorder %s570_s24, %s563_s11 }
  0x3e   : > { %p567_p10 = pneg %p566_p8  ;;  %p573_p2 = por %p572_p13, %p571_p11 }
  0x40   : > { %p574_p3 = pnand %p573_p2, %p567_p10 }
  0x42   : > { %577 = shalt.err (!%p574_p3)
}
  0x43   : > { %465 = dma.hbm_to_vmem [thread:$0]  (!%p756_p7), %s754_s23, 128, %s760_s30, %s165_s26  }
  0x44   : > { %p841_p0 = scmp.ne.s32.totalorder %s836_s21, 0 }
  0x45   : > { %s189_s28 = sand.u32 (!%p841_p0), 1, %s616_s13   ;;  %p842_p12 = scmp.ne.s32.totalorder (!%p841_p0), %s835_s20, 0 }
  0x46   : > { %187 = sbr.rel (%p841_p0) target bundleno = 573 (0x23d), region = 32  ;;  %s437_s29 = sshll.u32 (!%p841_p0), %s189_s28, 3 }
  0x47   : > { %s190_s27 = scalar_lea.sflag (!%p841_p0), [#allocation4], %s189_s28  ;;  %s193_s5 = scalar_lea.vmem (!%p841_p0), [#allocation3], %s437_s29 }
  0x4d   : > { %603 = dma.done.wait (%p842_p12), %s190_s27, 128  }
  0x4e   : > { %605 = vsyncadd (%p842_p12), %s190_s27, 4294967168  ;;  %p843_p6 = scmp.ne.s32.totalorder %s834_s19, 0 }
  0x50   : > { %607 = dma.done.wait (%p843_p6), [#allocation6], 64  }
  0x51   : > { %609 = vsyncadd (%p843_p6), [#allocation6], 4294967232  ;;  %v229_v0 = vld [vmem:[%s193_s5] sm:$0xf]  ;;  %v230_v1 = vld [vmem:[%s193_s5 + $0x4] sm:$0xf]  ;;  %v239_v6 = vlaneseq }
  0x52   : > { %vm232_vm0 = vcmask 1043456   ;;  %v231_v2 = vadd.f32 %v230_v1, %v229_v0  ;;  %vm227_vm1 = vcmask 57344   ;;  %v636_v4 = vmov 0.0   ;;  %v237_v5 = vld [vmem:[#allocation5] sm:$0xf]  ;;  %p219_p7 = scmp.lt.s32.totalorder %s624_s15, 1 }
  0x53   : > { %447 = vmatprep.subr.mxu0 %v636_v4  ;;  %228 = vst.msk [vmem:[#allocation2] sm:$0x1] %vm227_vm1, %v636_v4  ;;  %vm637_vm2 = vmmov 0   ;;  %v240_v7 = vand.u32 127, %v239_v6  ;;  %v242_v8 = vshrl.u32 %v239_v6, 7  ;;  %vm245_vm3 = vcmask 31744  }
  0x54   : > { %v233_v3 = vsel %vm232_vm0, %v231_v2, 0.0  ;;  %448 = vmatpush3.msk.msra.mxu0 %vm232_vm0, %v237_v5  ;;  %449 = vmatprep.mubr.msk.f32.mxu0 %vm637_vm2, %v636_v4  ;;  %v328_v16 = vld [vmem:[%s828_s2] sm:$0x1]  ;;  %s852_s15 = smov (!%p219_p7, %s624_s15), 1  ;;  %vm338_vm4 = vcmask 7168  }
  0x55   : > { %234 = vadd.xlane.f32.xlu0 %v233_v3  ;;  %v243_v9 = vsub.s32 %v240_v7, %v242_v8  ;;  %v333_v19 = vsub.s32 0, %v242_v8  ;;  %s439_s21 = sshll.u32 %s852_s15, 3 }
  0x56   : > { %s222_s4 = scalar_lea.vmem %s829_s3, %s439_s21 }
  0x5a   : > { %v236_v12 = vld [vmem:[#allocation2] sm:$0x1] }
  0xe2   : > { %v235_v10 = vpop.xlane.xlu0 %234 }
  0xe3   : > { %v244_v11 = vrot.slane %v235_v10, %v243_v9 }
  0xe5   : > { %450 = vmatmul.mubr.msk.f32.vlgmr.msra.gmra.mrb[0].mxu0 %vm245_vm3, %v244_v11 }
 0x1b8   : > { %v317_v13 = vpop.f32.mrb[0].mxu0 }
 0x1b9   : > { %v321_v14 = vadd.f32 %v317_v13, %v236_v12  ;;  %v451_v15 = vpop.f32.mrb[1].mxu0 }
 0x1bb   : > { %323 = vst.msk [vmem:[#allocation2] sm:$0x1] %vm227_vm1, %v321_v14 }
 0x1c2   : > { %v327_v17 = vld [vmem:[#allocation2] sm:$0x1] }
 0x1c3   : > { %v329_v18 = vadd.f32 %v328_v16, %v327_v17 }
 0x1c5   : > { %v330_v20 = vmax.f32 %v329_v18, 0.0 }
 0x1c7   : > { %v334_v21 = vrot.slane %v330_v20, %v333_v19 }
 0x1c9   : > { %336 = vbcast.lane.b32.xlu0 %v334_v21, 256 }
 0x23b   : > { %v337_v22 = vpop.permute.xlu0 %336 }
 0x23c   : > { %339 = vst.msk [vmem:[%s222_s4] sm:$0xff] %vm338_vm4, %v337_v22 }
 0x23d PF: > { %s17_s17 = sadd.s32 1, %s632_s17   ;;  %s844_s12 = smov %s616_s13 }
 0x23e   : > { %p14_p9 = scmp.ge.s32.totalorder %s17_s17, 4   ;;  %s845_s13 = smov %s620_s14 }
 0x23f   : > { %s846_s14 = smov %s749_s22  ;;  %s847_s15 = smov %s628_s16 }
 0x240   : > { %s848_s16 = smov %s850_s25  ;;  %16 = sbr.rel (!%p14_p9) target bundleno = 5 (0x5), region = 85 }
 0x247   :  { %359 = vsyncpa [#allocation4], 1 }
 0x248   :  { %361 = vsyncpa [#allocation4 + $0x1], 1 }
 0x249   :  { %362 = vsyncpa [#allocation6], 1 }

</bundles_post_ra>
